<compile_context>
chip_gen: v6e
topology: v6e:2x2x1
jax: 0.10.0
libtpu: 0.0.40
codegen_flags: <defaults>
</compile_context>

<pallas_src>
import functools
import math

import jax
import jax.numpy as jnp
from jax import lax
from jax.experimental import pallas as pl
from jax.experimental.pallas import tpu as pltpu


def _round_up(x, m):
    return (x + m - 1) // m * m


def _lcm(a, b):
    return a * b // math.gcd(a, b)


def _kernel(P, D, Dp, eps,
            tok_ref, pin_ref, pos_ref, wconv_ref, wemb_ref, vecs_ref,
            out_ref):
    """One tile of TN rows.  All accumulation / LayerNorm in f32."""
    TN = tok_ref.shape[0]
    Ep = pin_ref.shape[-1]
    cdt = tok_ref.dtype                                   # compute (MXU input) dtype

    # --- PinyinEmbeddingV2: conv1(k=1) + conv2(k=2) as ONE fused matmul, M = P*TN ---
    pin2d = pin_ref[...].reshape(P * TN, Ep)              # leading-dim collapse (aligned)
    conv = jnp.dot(pin2d, wconv_ref[...], preferred_element_type=jnp.float32)
    conv = conv.reshape(P, TN, 3 * Dp)                    # [conv1 | conv2-tap0 | conv2-tap1]

    # max-pool over pinyin_locs: elementwise slab maxes on the VPU (biases folded away)
    y1 = conv[0, :, :Dp]
    for p in range(1, P):
        y1 = jnp.maximum(y1, conv[p, :, :Dp])
    y2 = conv[0, :, Dp:2 * Dp] + conv[1, :, 2 * Dp:]
    for p in range(1, P - 1):
        y2 = jnp.maximum(y2, conv[p, :, Dp:2 * Dp] + conv[p + 1, :, 2 * Dp:])

    # --- token path + composed (fc -> map_fc) pinyin path + fused bias/segment + pos ---
    emb = jnp.dot(tok_ref[...], wemb_ref[:Dp, :], preferred_element_type=jnp.float32)
    emb = emb + jnp.dot(y1.astype(cdt), wemb_ref[Dp:2 * Dp, :],
                        preferred_element_type=jnp.float32)
    emb = emb + jnp.dot(y2.astype(cdt), wemb_ref[2 * Dp:, :],
                        preferred_element_type=jnp.float32)
    emb = emb + vecs_ref[0:1, :] + pos_ref[...]

    # --- LayerNorm over the true D lanes (padded lanes of emb are exactly zero) ---
    inv_d = 1.0 / D
    mean = jnp.sum(emb, axis=-1, keepdims=True) * inv_d
    centered = emb - mean
    if Dp != D:                                           # mask padded lanes (static)
        lane = lax.broadcasted_iota(jnp.int32, (1, Dp), 1)
        centered = jnp.where(lane < D, centered, 0.0)
    var = jnp.sum(centered * centered, axis=-1, keepdims=True) * inv_d
    normed = centered * lax.rsqrt(var + eps)
    out_ref[...] = (normed * vecs_ref[1:2, :] + vecs_ref[2:3, :]).astype(out_ref.dtype)


def bert_embedding_pinyin(input_ids, pinyin_ids, params, *, eps=1e-12,
                          tile_rows=512, compute_dtype=jnp.bfloat16):
    B, S = input_ids.shape
    P = pinyin_ids.shape[-1]
    D = params["tok_emb"].shape[1]
    E = params["pin_emb"].shape[1]
    assert P >= 2, "PinyinEmbeddingV2 conv2 (kernel_size=2) requires pinyin_locs >= 2"
    N = B * S

    Dp = _round_up(D, 128)                                # lane-dense hidden dim
    Ep = _round_up(E, 128)                                # lane-dense pinyin embed dim
    bpe = jnp.dtype(compute_dtype).itemsize

    # --- pick TN: multiple of lcm(S, 8) -> every tile covers whole sentences, and the
    #     (8,128) sublane constraint holds.  Auto-shrink to stay inside a VMEM budget
    #     (v7x only has 64 MiB of VMEM per TensorCore). ---
    unit = _lcm(S, 8)
    TN = max(unit, (tile_rows // unit) * unit)
    TN = min(TN, _round_up(N, unit))

    def vmem_est(tn):
        stream = 2 * (tn * Dp * bpe + P * tn * Ep * bpe + tn * Dp * 4)       # dbl-buffered io
        weights = 2 * (tn * Dp * 4 + Ep * 3 * Dp * bpe + 3 * Dp * Dp * bpe + 8 * Dp * 4)
        interm = P * tn * 3 * Dp * 4 + 8 * tn * Dp * 4                       # f32 temporaries
        return stream + weights + interm

    budget = 40 * (1 << 20)
    while TN > unit and vmem_est(TN) > budget:
        TN = max(unit, (TN // 2) // unit * unit)

    N_pad = _round_up(N, TN)
    grid = (N_pad // TN,)                                 # >1 step -> both v7x TCs get work
    vmem_limit = int(min(64 * (1 << 20), max(32 * (1 << 20), 2 * vmem_est(TN))))

    f32 = lambda a: jnp.asarray(a, jnp.float32)
    pad2 = lambda a, r, c: jnp.pad(a, ((0, r - a.shape[0]), (0, c - a.shape[1])))

    # --- trace-time weight composition (fc -> map_fc folded; biases & segment folded) ---
    wmap1, wmap2 = f32(params["wmap1"]), f32(params["wmap2"])
    w1p = f32(params["wfc1"]) @ wmap2                     # (D, D)
    w2p = f32(params["wfc2"]) @ wmap2                     # (D, D)
    bias = (f32(params["b1"]) @ w1p + f32(params["b2"]) @ w2p
            + f32(params["bfc"]) @ wmap2 + f32(params["bmap"])
            + f32(params["seg_emb"][0]))                  # token_type_ids == 0

    wconv = jnp.concatenate([pad2(f32(params["w1"]), Ep, Dp),
                             pad2(f32(params["w2a"]), Ep, Dp),
                             pad2(f32(params["w2b"]), Ep, Dp)],
                            axis=1).astype(compute_dtype)             # (Ep, 3*Dp)
    wemb = jnp.concatenate([pad2(wmap1, Dp, Dp),
                            pad2(w1p, Dp, Dp),
                            pad2(w2p, Dp, Dp)],
                           axis=0).astype(compute_dtype)              # (3*Dp, Dp)
    vec = lambda a: jnp.pad(f32(a).reshape(1, -1), ((0, 0), (0, Dp - D)))
    vecs = jnp.concatenate([vec(bias), vec(params["gamma"]), vec(params["beta"]),
                            jnp.zeros((5, Dp), jnp.float32)], axis=0)  # (8, Dp) f32

    # position slab resident in VMEM; identical for every tile because TN % S == 0
    reps = TN // S
    pos = jnp.pad(f32(params["pos_emb"][:S]), ((0, 0), (0, Dp - D)))   # (S, Dp)
    pos_tiled = jnp.tile(pos, (reps, 1))                               # (TN, Dp) f32

    # --- embedding gathers (XLA glue), streamed to the kernel in compute_dtype ---
    tok = params["tok_emb"][input_ids.reshape(N)]                      # (N, D)
    tok = jnp.pad(tok, ((0, N_pad - N), (0, Dp - D))).astype(compute_dtype)
    pin_ids_t = pinyin_ids.reshape(N, P).T                             # (P, N)
    pin = params["pin_emb"][pin_ids_t]                                 # (P, N, E)
    pin = jnp.pad(pin, ((0, 0), (0, N_pad - N), (0, Ep - E))).astype(compute_dtype)

    grid_spec = pltpu.PrefetchScalarGridSpec(
        num_scalar_prefetch=0,
        grid=grid,
        in_specs=[
            pl.BlockSpec((TN, Dp), lambda i: (i, 0)),          # token embeddings
            pl.BlockSpec((P, TN, Ep), lambda i: (0, i, 0)),    # pinyin embeddings (P-major)
            pl.BlockSpec((TN, Dp), lambda i: (0, 0)),          # position slab (resident)
            pl.BlockSpec((Ep, 3 * Dp), lambda i: (0, 0)),      # fused conv weights
            pl.BlockSpec((3 * Dp, Dp), lambda i: (0, 0)),      # fused map weights
            pl.BlockSpec((8, Dp), lambda i: (0, 0)),           # bias / gamma / beta
        ],
        out_specs=pl.BlockSpec((TN, Dp), lambda i: (i, 0)),
    )

    out = pl.pallas_call(
        functools.partial(_kernel, P, D, Dp, eps),
        out_shape=jax.ShapeDtypeStruct((N_pad, Dp), jnp.float32),
        grid_spec=grid_spec,
        compiler_params=pltpu.CompilerParams(
            dimension_semantics=("parallel",),
            vmem_limit_bytes=vmem_limit),
    )(tok, pin, pos_tiled, wconv, wemb, vecs)

    return out[:N, :D].reshape(B, S, D)


def reference(input_ids, pinyin_ids, params, eps=1e-12):
    """Plain-JAX (f32, uncomposed) re-statement of the PyTorch forward (eval mode)."""
    B, S = input_ids.shape
    tok = params["tok_emb"][input_ids]                       # (B,S,D)
    pin = params["pin_emb"][pinyin_ids]                      # (B,S,P,E)
    y1 = jnp.einsum("bspe,ed->bspd", pin, params["w1"]) + params["b1"]
    y1 = jnp.max(y1, axis=2)
    y2 = (jnp.einsum("bspe,ed->bspd", pin[:, :, :-1], params["w2a"])
          + jnp.einsum("bspe,ed->bspd", pin[:, :, 1:], params["w2b"])
          + params["b2"])
    y2 = jnp.max(y2, axis=2)
    pin_out = y1 @ params["wfc1"] + y2 @ params["wfc2"] + params["bfc"]
    emb = tok @ params["wmap1"] + pin_out @ params["wmap2"] + params["bmap"]
    emb = emb + params["pos_emb"][jnp.arange(S)][None] + params["seg_emb"][0]
    mean = emb.mean(-1, keepdims=True)
    var = ((emb - mean) ** 2).mean(-1, keepdims=True)
    return (emb - mean) / jnp.sqrt(var + eps) * params["gamma"] + params["beta"]


if __name__ == "__main__":
    # Small shapes consistent with the module's forward.
    B, S, D, E, P = 2, 8, 32, 32, 6          # dim=32, pinyin_embedding_dim=32, pinyin_locs=6
    vocab, pinyin_vocab, n_segments, max_len = 64, 48, 2, 16

    key = jax.random.PRNGKey(0)
    ks = jax.random.split(key, 19)
    init = lambda k, shape, s=0.02: s * jax.random.normal(k, shape, jnp.float32)

    params = {
        "tok_emb": init(ks[0], (vocab, D)),
        "pin_emb": init(ks[1], (pinyin_vocab, E)),
        "pos_emb": init(ks[2], (max_len, D)),
        "seg_emb": init(ks[3], (n_segments, D)),
        # conv1 (k=1): weight (D,E,1) stored transposed as (E,D)
        "w1": init(ks[4], (E, D), 0.1), "b1": init(ks[5], (D,), 0.1),
        # conv2 (k=2): the two taps, each (E,D)
        "w2a": init(ks[6], (E, D), 0.1), "w2b": init(ks[7], (E, D), 0.1), "b2": init(ks[8], (D,), 0.1),
        # fc: Linear(2D -> D), weight.T split into two (D,D) halves
        "wfc1": init(ks[9], (D, D), 0.1), "wfc2": init(ks[10], (D, D), 0.1), "bfc": init(ks[11], (D,), 0.1),
        # map_fc: Linear(2D -> D), weight.T split into two (D,D) halves
        "wmap1": init(ks[12], (D, D), 0.1), "wmap2": init(ks[13], (D, D), 0.1), "bmap": init(ks[14], (D,), 0.1),
        # LayerNorm
        "gamma": 1.0 + init(ks[15], (D,), 0.1), "beta": init(ks[16], (D,), 0.1),
    }

    input_ids = jax.random.randint(ks[17], (B, S), 0, vocab, dtype=jnp.int32)
    pinyin_ids = jax.random.randint(ks[18], (B, S, P), 0, pinyin_vocab, dtype=jnp.int32)

    out = bert_embedding_pinyin(input_ids, pinyin_ids, params)
    out = jax.block_until_ready(out)

    ref = reference(input_ids, pinyin_ids, params)
    assert out.shape == (B, S, D)
    assert bool(jnp.allclose(out, ref, atol=5e-2, rtol=5e-2)), "kernel mismatch vs reference"
    print("KERNEL_OK")
</pallas_src>

<mosaic_0001>
module attributes {stable_mosaic.version = 11 : i64} {
  func.func @_kernel(%arg0: i32, %arg1: memref<16x128xbf16, #tpu.memory_space<vmem>>, %arg2: memref<6x16x128xbf16, #tpu.memory_space<vmem>>, %arg3: memref<16x128xf32, #tpu.memory_space<vmem>>, %arg4: memref<128x384xbf16, #tpu.memory_space<vmem>>, %arg5: memref<384x128xbf16, #tpu.memory_space<vmem>>, %arg6: memref<8x128xf32, #tpu.memory_space<vmem>>, %arg7: memref<16x128xf32, #tpu.memory_space<vmem>>) attributes {dimension_semantics = [#tpu.dimension_semantics<parallel>], iteration_bounds = array<i64: 1>, scalar_prefetch = 0 : i64, scratch_operands = 0 : i64, tpu.core_type = #tpu.core_type<tc>, window_params = [{transform_indices = @transform_0, window_bounds = array<i64: 16, 128>}, {transform_indices = @transform_1, window_bounds = array<i64: 6, 16, 128>}, {pipeline_mode = #tpu.pipeline_mode<synchronous>, transform_indices = @transform_2, window_bounds = array<i64: 16, 128>}, {pipeline_mode = #tpu.pipeline_mode<synchronous>, transform_indices = @transform_3, window_bounds = array<i64: 128, 384>}, {pipeline_mode = #tpu.pipeline_mode<synchronous>, transform_indices = @transform_4, window_bounds = array<i64: 384, 128>}, {pipeline_mode = #tpu.pipeline_mode<synchronous>, transform_indices = @transform_5, window_bounds = array<i64: 8, 128>}, {transform_indices = @transform_6, window_bounds = array<i64: 16, 128>}]} {
    %c0 = arith.constant 0 : index
    %c0_0 = arith.constant 0 : index
    %c0_1 = arith.constant 0 : index
    %0 = vector.load %arg2[%c0, %c0_0, %c0_1] : memref<6x16x128xbf16, #tpu.memory_space<vmem>>, vector<6x16x128xbf16>
    %1 = vector.shape_cast %0 : vector<6x16x128xbf16> to vector<96x128xbf16>
    %c0_2 = arith.constant 0 : index
    %c0_3 = arith.constant 0 : index
    %2 = vector.load %arg4[%c0_2, %c0_3] : memref<128x384xbf16, #tpu.memory_space<vmem>>, vector<128x384xbf16>
    %cst = arith.constant dense<0.000000e+00> : vector<96x384xf32>
    %3 = tpu.matmul %1, %2, %cst {dimension_numbers = #tpu.dot_dimension_numbers<[1], [0], [0], [1], [0, 0, 1, 1], [], []>} : vector<96x128xbf16>, vector<128x384xbf16>, vector<96x384xf32> -> vector<96x384xf32>
    %4 = vector.shape_cast %3 : vector<96x384xf32> to vector<6x16x384xf32>
    %5 = vector.extract_strided_slice %4 {offsets = [0, 0, 0], sizes = [1, 16, 128], strides = [1, 1, 1]} : vector<6x16x384xf32> to vector<1x16x128xf32>
    %6 = vector.shape_cast %5 : vector<1x16x128xf32> to vector<16x128xf32>
    %7 = vector.extract_strided_slice %4 {offsets = [1, 0, 0], sizes = [1, 16, 128], strides = [1, 1, 1]} : vector<6x16x384xf32> to vector<1x16x128xf32>
    %8 = vector.shape_cast %7 : vector<1x16x128xf32> to vector<16x128xf32>
    %9 = arith.maximumf %6, %8 : vector<16x128xf32>
    %10 = vector.extract_strided_slice %4 {offsets = [2, 0, 0], sizes = [1, 16, 128], strides = [1, 1, 1]} : vector<6x16x384xf32> to vector<1x16x128xf32>
    %11 = vector.shape_cast %10 : vector<1x16x128xf32> to vector<16x128xf32>
    %12 = arith.maximumf %9, %11 : vector<16x128xf32>
    %13 = vector.extract_strided_slice %4 {offsets = [3, 0, 0], sizes = [1, 16, 128], strides = [1, 1, 1]} : vector<6x16x384xf32> to vector<1x16x128xf32>
    %14 = vector.shape_cast %13 : vector<1x16x128xf32> to vector<16x128xf32>
    %15 = arith.maximumf %12, %14 : vector<16x128xf32>
    %16 = vector.extract_strided_slice %4 {offsets = [4, 0, 0], sizes = [1, 16, 128], strides = [1, 1, 1]} : vector<6x16x384xf32> to vector<1x16x128xf32>
    %17 = vector.shape_cast %16 : vector<1x16x128xf32> to vector<16x128xf32>
    %18 = arith.maximumf %15, %17 : vector<16x128xf32>
    %19 = vector.extract_strided_slice %4 {offsets = [5, 0, 0], sizes = [1, 16, 128], strides = [1, 1, 1]} : vector<6x16x384xf32> to vector<1x16x128xf32>
    %20 = vector.shape_cast %19 : vector<1x16x128xf32> to vector<16x128xf32>
    %21 = arith.maximumf %18, %20 : vector<16x128xf32>
    %22 = vector.extract_strided_slice %4 {offsets = [0, 0, 128], sizes = [1, 16, 128], strides = [1, 1, 1]} : vector<6x16x384xf32> to vector<1x16x128xf32>
    %23 = vector.shape_cast %22 : vector<1x16x128xf32> to vector<16x128xf32>
    %24 = vector.extract_strided_slice %4 {offsets = [1, 0, 256], sizes = [1, 16, 128], strides = [1, 1, 1]} : vector<6x16x384xf32> to vector<1x16x128xf32>
    %25 = vector.shape_cast %24 : vector<1x16x128xf32> to vector<16x128xf32>
    %26 = arith.addf %23, %25 : vector<16x128xf32>
    %27 = vector.extract_strided_slice %4 {offsets = [1, 0, 128], sizes = [1, 16, 128], strides = [1, 1, 1]} : vector<6x16x384xf32> to vector<1x16x128xf32>
    %28 = vector.shape_cast %27 : vector<1x16x128xf32> to vector<16x128xf32>
    %29 = vector.extract_strided_slice %4 {offsets = [2, 0, 256], sizes = [1, 16, 128], strides = [1, 1, 1]} : vector<6x16x384xf32> to vector<1x16x128xf32>
    %30 = vector.shape_cast %29 : vector<1x16x128xf32> to vector<16x128xf32>
    %31 = arith.addf %28, %30 : vector<16x128xf32>
    %32 = arith.maximumf %26, %31 : vector<16x128xf32>
    %33 = vector.extract_strided_slice %4 {offsets = [2, 0, 128], sizes = [1, 16, 128], strides = [1, 1, 1]} : vector<6x16x384xf32> to vector<1x16x128xf32>
    %34 = vector.shape_cast %33 : vector<1x16x128xf32> to vector<16x128xf32>
    %35 = vector.extract_strided_slice %4 {offsets = [3, 0, 256], sizes = [1, 16, 128], strides = [1, 1, 1]} : vector<6x16x384xf32> to vector<1x16x128xf32>
    %36 = vector.shape_cast %35 : vector<1x16x128xf32> to vector<16x128xf32>
    %37 = arith.addf %34, %36 : vector<16x128xf32>
    %38 = arith.maximumf %32, %37 : vector<16x128xf32>
    %39 = vector.extract_strided_slice %4 {offsets = [3, 0, 128], sizes = [1, 16, 128], strides = [1, 1, 1]} : vector<6x16x384xf32> to vector<1x16x128xf32>
    %40 = vector.shape_cast %39 : vector<1x16x128xf32> to vector<16x128xf32>
    %41 = vector.extract_strided_slice %4 {offsets = [4, 0, 256], sizes = [1, 16, 128], strides = [1, 1, 1]} : vector<6x16x384xf32> to vector<1x16x128xf32>
    %42 = vector.shape_cast %41 : vector<1x16x128xf32> to vector<16x128xf32>
    %43 = arith.addf %40, %42 : vector<16x128xf32>
    %44 = arith.maximumf %38, %43 : vector<16x128xf32>
    %45 = vector.extract_strided_slice %4 {offsets = [4, 0, 128], sizes = [1, 16, 128], strides = [1, 1, 1]} : vector<6x16x384xf32> to vector<1x16x128xf32>
    %46 = vector.shape_cast %45 : vector<1x16x128xf32> to vector<16x128xf32>
    %47 = vector.extract_strided_slice %4 {offsets = [5, 0, 256], sizes = [1, 16, 128], strides = [1, 1, 1]} : vector<6x16x384xf32> to vector<1x16x128xf32>
    %48 = vector.shape_cast %47 : vector<1x16x128xf32> to vector<16x128xf32>
    %49 = arith.addf %46, %48 : vector<16x128xf32>
    %50 = arith.maximumf %44, %49 : vector<16x128xf32>
    %c0_4 = arith.constant 0 : index
    %c0_5 = arith.constant 0 : index
    %51 = vector.load %arg1[%c0_4, %c0_5] : memref<16x128xbf16, #tpu.memory_space<vmem>>, vector<16x128xbf16>
    %c0_6 = arith.constant 0 : index
    %c0_7 = arith.constant 0 : index
    %52 = vector.load %arg5[%c0_6, %c0_7] : memref<384x128xbf16, #tpu.memory_space<vmem>>, vector<128x128xbf16>
    %cst_8 = arith.constant dense<0.000000e+00> : vector<16x128xf32>
    %53 = tpu.matmul %51, %52, %cst_8 {dimension_numbers = #tpu.dot_dimension_numbers<[1], [0], [0], [1], [0, 0, 1, 1], [], []>} : vector<16x128xbf16>, vector<128x128xbf16>, vector<16x128xf32> -> vector<16x128xf32>
    %54 = arith.truncf %21 : vector<16x128xf32> to vector<16x128xbf16>
    %c128 = arith.constant 128 : index
    %c0_9 = arith.constant 0 : index
    %55 = vector.load %arg5[%c128, %c0_9] : memref<384x128xbf16, #tpu.memory_space<vmem>>, vector<128x128xbf16>
    %cst_10 = arith.constant dense<0.000000e+00> : vector<16x128xf32>
    %56 = tpu.matmul %54, %55, %cst_10 {dimension_numbers = #tpu.dot_dimension_numbers<[1], [0], [0], [1], [0, 0, 1, 1], [], []>} : vector<16x128xbf16>, vector<128x128xbf16>, vector<16x128xf32> -> vector<16x128xf32>
    %57 = arith.addf %53, %56 : vector<16x128xf32>
    %58 = arith.truncf %50 : vector<16x128xf32> to vector<16x128xbf16>
    %c256 = arith.constant 256 : index
    %c0_11 = arith.constant 0 : index
    %59 = vector.load %arg5[%c256, %c0_11] : memref<384x128xbf16, #tpu.memory_space<vmem>>, vector<128x128xbf16>
    %cst_12 = arith.constant dense<0.000000e+00> : vector<16x128xf32>
    %60 = tpu.matmul %58, %59, %cst_12 {dimension_numbers = #tpu.dot_dimension_numbers<[1], [0], [0], [1], [0, 0, 1, 1], [], []>} : vector<16x128xbf16>, vector<128x128xbf16>, vector<16x128xf32> -> vector<16x128xf32>
    %61 = arith.addf %57, %60 : vector<16x128xf32>
    %c0_13 = arith.constant 0 : index
    %c0_14 = arith.constant 0 : index
    %62 = vector.load %arg6[%c0_13, %c0_14] : memref<8x128xf32, #tpu.memory_space<vmem>>, vector<1x128xf32>
    %63 = vector.broadcast %62 : vector<1x128xf32> to vector<16x128xf32>
    %64 = arith.addf %61, %63 : vector<16x128xf32>
    %c0_15 = arith.constant 0 : index
    %c0_16 = arith.constant 0 : index
    %65 = vector.load %arg3[%c0_15, %c0_16] : memref<16x128xf32, #tpu.memory_space<vmem>>, vector<16x128xf32>
    %66 = arith.addf %64, %65 : vector<16x128xf32>
    %cst_17 = arith.constant dense<0.000000e+00> : vector<16xf32>
    %67 = vector.multi_reduction <add>, %66, %cst_17 [1] : vector<16x128xf32> to vector<16xf32>
    %68 = vector.shape_cast %67 : vector<16xf32> to vector<16x1xf32>
    %cst_18 = arith.constant 3.125000e-02 : f32
    %69 = vector.broadcast %cst_18 : f32 to vector<16x1xf32>
    %70 = arith.mulf %68, %69 : vector<16x1xf32>
    %71 = vector.broadcast %70 : vector<16x1xf32> to vector<16x128xf32>
    %72 = arith.subf %66, %71 : vector<16x128xf32>
    %73 = tpu.iota {dimensions = array<i32: 1>} : vector<1x128xi32>
    %c32_i32 = arith.constant 32 : i32
    %74 = vector.broadcast %c32_i32 : i32 to vector<1x128xi32>
    %75 = arith.cmpi slt, %73, %74 : vector<1x128xi32>
    %cst_19 = arith.constant 0.000000e+00 : f32
    %76 = vector.shape_cast %75 : vector<1x128xi1> to vector<1x128xi1>
    %77 = vector.broadcast %76 : vector<1x128xi1> to vector<16x128xi1>
    %78 = vector.broadcast %cst_19 : f32 to vector<16x128xf32>
    %79 = arith.select %77, %72, %78 : vector<16x128xi1>, vector<16x128xf32>
    %80 = arith.mulf %79, %79 : vector<16x128xf32>
    %cst_20 = arith.constant dense<0.000000e+00> : vector<16xf32>
    %81 = vector.multi_reduction <add>, %80, %cst_20 [1] : vector<16x128xf32> to vector<16xf32>
    %82 = vector.shape_cast %81 : vector<16xf32> to vector<16x1xf32>
    %cst_21 = arith.constant 3.125000e-02 : f32
    %83 = vector.broadcast %cst_21 : f32 to vector<16x1xf32>
    %84 = arith.mulf %82, %83 : vector<16x1xf32>
    %cst_22 = arith.constant 9.99999996E-13 : f32
    %85 = vector.broadcast %cst_22 : f32 to vector<16x1xf32>
    %86 = arith.addf %84, %85 : vector<16x1xf32>
    %87 = math.rsqrt %86 : vector<16x1xf32>
    %88 = vector.broadcast %87 : vector<16x1xf32> to vector<16x128xf32>
    %89 = arith.mulf %79, %88 : vector<16x128xf32>
    %c1 = arith.constant 1 : index
    %c0_23 = arith.constant 0 : index
    %90 = vector.load %arg6[%c1, %c0_23] : memref<8x128xf32, #tpu.memory_space<vmem>>, vector<1x128xf32>
    %91 = vector.broadcast %90 : vector<1x128xf32> to vector<16x128xf32>
    %92 = arith.mulf %89, %91 : vector<16x128xf32>
    %c2 = arith.constant 2 : index
    %c0_24 = arith.constant 0 : index
    %93 = vector.load %arg6[%c2, %c0_24] : memref<8x128xf32, #tpu.memory_space<vmem>>, vector<1x128xf32>
    %94 = vector.broadcast %93 : vector<1x128xf32> to vector<16x128xf32>
    %95 = arith.addf %92, %94 : vector<16x128xf32>
    %c0_25 = arith.constant 0 : index
    %c0_26 = arith.constant 0 : index
    %96 = vector.load %arg7[%c0_25, %c0_26] : memref<16x128xf32, #tpu.memory_space<vmem>>, vector<16x128xf32>
    tpu.vector_store %arg7[%c0_25, %c0_26], %95 {strides = array<i32>} : memref<16x128xf32, #tpu.memory_space<vmem>>, vector<16x128xf32>,
    return
  }
  func.func @transform_0(%arg0: i32) -> (i32, i32) {
    %c0_i32 = arith.constant 0 : i32
    %c0_i32_0 = arith.constant 0 : i32
    return %arg0, %c0_i32 : i32, i32
  }
  func.func @transform_1(%arg0: i32) -> (i32, i32, i32) {
    %c0_i32 = arith.constant 0 : i32
    %c0_i32_0 = arith.constant 0 : i32
    %c0_i32_1 = arith.constant 0 : i32
    return %c0_i32, %arg0, %c0_i32_0 : i32, i32, i32
  }
  func.func @transform_2(%arg0: i32) -> (i32, i32) {
    %c0_i32 = arith.constant 0 : i32
    %c0_i32_0 = arith.constant 0 : i32
    %c0_i32_1 = arith.constant 0 : i32
    return %c0_i32, %c0_i32_0 : i32, i32
  }
  func.func @transform_3(%arg0: i32) -> (i32, i32) {
    %c0_i32 = arith.constant 0 : i32
    %c0_i32_0 = arith.constant 0 : i32
    %c0_i32_1 = arith.constant 0 : i32
    return %c0_i32, %c0_i32_0 : i32, i32
  }
  func.func @transform_4(%arg0: i32) -> (i32, i32) {
    %c0_i32 = arith.constant 0 : i32
    %c0_i32_0 = arith.constant 0 : i32
    %c0_i32_1 = arith.constant 0 : i32
    return %c0_i32, %c0_i32_0 : i32, i32
  }
  func.func @transform_5(%arg0: i32) -> (i32, i32) {
    %c0_i32 = arith.constant 0 : i32
    %c0_i32_0 = arith.constant 0 : i32
    %c0_i32_1 = arith.constant 0 : i32
    return %c0_i32, %c0_i32_0 : i32, i32
  }
  func.func @transform_6(%arg0: i32) -> (i32, i32) {
    %c0_i32 = arith.constant 0 : i32
    %c0_i32_0 = arith.constant 0 : i32
    return %arg0, %c0_i32 : i32, i32
  }
}

</mosaic_0001>

<bundles_post_ra>
// kernel: tpu_custom_call.1
= control target key start
LH: loop header
LB: loop body
LE: loop exit
PB: predicated region body
PF: predicated region fallthrough
CT: control target
= control target key end

     0   :  { %11 = vsyncpa [#allocation3], 0  ;;  %s1426_s0 = inlined_call_operand.hbm [shape: bf16[16,128], index: 0, kind: input, shape index: {}]   ;;  %s1427_s1 = inlined_call_operand.hbm [shape: bf16[6,16,128], index: 1, kind: input, shape index: {}]   ;;  %s1428_s2 = inlined_call_operand.hbm [shape: f32[16,128], index: 2, kind: input, shape index: {}]   ;;  %s1429_s3 = inlined_call_operand.hbm [shape: bf16[128,384], index: 3, kind: input, shape index: {}]   ;;  %s1430_s4 = inlined_call_operand.hbm [shape: bf16[384,128], index: 4, kind: input, shape index: {}]   ;;  %s1431_s5 = inlined_call_operand.vmem [shape: f32[8,128], index: 5, kind: input, shape index: {}]   ;;  %s1432_s6 = inlined_call_operand.hbm [shape: f32[16,128], index: 6, kind: output, shape index: {}]  }
   0x1   :  { %12 = vsyncpa [#allocation6], 0 }
   0x2   :  { %13 = vsyncpa [#allocation9], 0 }
   0x3   :  { %14 = vsyncpa [#allocation4], 0  ;;  %s1298_s21 = smov [#allocation5]   ;;  %s1299_s23 = smov [#allocation8]  }
   0x4   :  { %s32_s22 = sshll.u32 %s1298_s21, 4  ;;  %s56_s24 = sshll.u32 %s1299_s23, 4  ;;  %s33_s22 = int_to_ptr.vmem [resolvable:$true] %s32_s22  ;;  %s57_s24 = int_to_ptr.vmem [resolvable:$true] %s56_s24 }
   0x5   :  { %s1178_s25 = scalar_lea.vmem %s33_s22, 768  ;;  %p1183_p1 = scmp.lt.s32.totalorder %s33_s22, %s33_s22 }
   0x6   :  { %p1179_p0 = scmp.ne.s32.totalorder %s33_s22, %s1178_s25  ;;  %p1184_p2 = scmp.lt.s32.totalorder %s1178_s25, %s1178_s25 }
   0x8   :  { %p1185_p3 = por %p1184_p2, %p1183_p1 }
   0xa   :  { %p1186_p4 = pnand %p1185_p3, %p1179_p0 }
   0xc   :  { %1189 = shalt.err (!%p1186_p4)
}
   0xd   :  { %s1300_s26 = smov 64   ;;  %s1301_s27 = smov 4  }
   0xe   :  { %38 = dma.hbm_to_vmem [thread:$0]  %s1427_s1, 768, %s33_s22, [#allocation6], %s1300_s26, %s1300_s26, %s1301_s27  }
   0xf   :  { %s1198_s30 = scalar_lea.vmem %s57_s24, 3072  ;;  %p1203_p6 = scmp.lt.s32.totalorder %s57_s24, %s57_s24 }
  0x10   :  { %p1199_p5 = scmp.ne.s32.totalorder %s57_s24, %s1198_s30  ;;  %p1204_p7 = scmp.lt.s32.totalorder %s1198_s30, %s1198_s30 }
  0x12   :  { %p1205_p8 = por %p1204_p7, %p1203_p6 }
  0x14   :  { %p1206_p9 = pnand %p1205_p8, %p1199_p5 }
  0x16   :  { %1209 = shalt.err (!%p1206_p9)
}
  0x17   :  { %s1302_s7 = smov 192   ;;  %s1303_s8 = smov 12  }
  0x18   :  { %62 = dma.hbm_to_vmem [thread:$0]  %s1429_s3, 3072, %s57_s24, [#allocation9], %s1302_s7, %s1302_s7, %s1303_s8  }
  0x19   :  { %s1304_s11 = smov [#allocation2]   ;;  %s1305_s13 = smov [#allocation7]  }
  0x1a   :  { %s20_s12 = sshll.u32 %s1304_s11, 4  ;;  %s44_s14 = sshll.u32 %s1305_s13, 4  ;;  %s21_s12 = int_to_ptr.vmem [resolvable:$true] %s20_s12  ;;  %s45_s14 = int_to_ptr.vmem [resolvable:$true] %s44_s14 }
  0x1b   :  { %s1218_s1 = scalar_lea.vmem %s21_s12, 128  ;;  %p1223_p11 = scmp.lt.s32.totalorder %s21_s12, %s21_s12 }
  0x1c   :  { %p1219_p10 = scmp.ne.s32.totalorder %s21_s12, %s1218_s1  ;;  %p1224_p12 = scmp.lt.s32.totalorder %s1218_s1, %s1218_s1 }
  0x1e   :  { %p1225_p13 = por %p1224_p12, %p1223_p11 }
  0x20   :  { %p1226_p0 = pnand %p1225_p13, %p1219_p10 }
  0x22   :  { %1229 = shalt.err (!%p1226_p0)
}
  0x23   :  { %26 = dma.hbm_to_vmem [thread:$0]  %s1426_s0, 128, %s21_s12, [#allocation3], %s1300_s26, %s1300_s26, %s1301_s27  }
  0x24   :  { %s1238_s3 = scalar_lea.vmem %s45_s14, 256  ;;  %p1243_p2 = scmp.lt.s32.totalorder %s45_s14, %s45_s14 }
  0x25   :  { %p1239_p1 = scmp.ne.s32.totalorder %s45_s14, %s1238_s3  ;;  %p1244_p3 = scmp.lt.s32.totalorder %s1238_s3, %s1238_s3 }
  0x27   :  { %p1245_p4 = por %p1244_p3, %p1243_p2 }
  0x29   :  { %p1246_p5 = pnand %p1245_p4, %p1239_p1 }
  0x2b   :  { %1249 = shalt.err (!%p1246_p5)
}
  0x2c   :  { %s1306_s17 = smov 128   ;;  %s1307_s18 = smov 8  }
  0x2d   :  { %50 = dma.hbm_to_vmem [thread:$0]  %s1428_s2, 256, %s45_s14, [#allocation6], %s1306_s17, %s1306_s17, %s1307_s18  }
  0x2e   :  { %s1308_s21 = smov [#allocation10]  }
  0x2f   :  { %s68_s22 = sshll.u32 %s1308_s21, 4  ;;  %s69_s22 = int_to_ptr.vmem [resolvable:$true] %s68_s22 }
  0x30   :  { %s1258_s0 = scalar_lea.vmem %s69_s22, 3072  ;;  %p1263_p7 = scmp.lt.s32.totalorder %s69_s22, %s69_s22 }
  0x31   :  { %p1259_p6 = scmp.ne.s32.totalorder %s69_s22, %s1258_s0  ;;  %p1264_p8 = scmp.lt.s32.totalorder %s1258_s0, %s1258_s0 }
  0x33   :  { %p1265_p9 = por %p1264_p8, %p1263_p7 }
  0x35   :  { %p1266_p10 = pnand %p1265_p9, %p1259_p6 }
  0x37   :  { %1269 = shalt.err (!%p1266_p10)
}
  0x38   :  { %74 = dma.hbm_to_vmem [thread:$0]  %s1430_s4, 3072, %s69_s22, [#allocation9], %s1300_s26, %s1300_s26, %s1301_s27  }
  0x39   :  { %1290 = dma.done.wait [#allocation3], 128  }
  0x3a   :  { %1291 = vsyncadd [#allocation3], 4294967168 }
  0x3b   :  { %1292 = dma.done.wait [#allocation6], 1024  }
  0x3c   :  { %1293 = vsyncadd [#allocation6], 4294966272 }
  0x3d   :  { %1294 = dma.done.wait [#allocation9], 6144  }
  0x3e   :  { %1295 = vsyncadd [#allocation9], 4294961152  ;;  %v1309_v0 = vmov 0   ;;  %v1103_v1 = vld [vmem:[#allocation8 + $0xac] ss:$12 sps:$4 sm:$0xff]   ;;  %v1135_v19 = vld [vmem:[#allocation5] sm:$0xff]  }
  0x3f   :  { %333 = vmatprep.mubr.bf16.mxu0 %v1309_v0  ;;  %v1105_v2 = vld [vmem:[#allocation8 + $0xb0] ss:$12 sps:$4 sm:$0xff]   ;;  %301 = vmatprep.subr.bf16.mxu0 %v1103_v1  ;;  %v1106_v3 = vld [vmem:[#allocation8 + $0xa8] ss:$12 sps:$4 sm:$0xff]   ;;  %v1109_v5 = vld [vmem:[#allocation8 + $0x98] ss:$12 sps:$4 sm:$0xff]  }
  0x40   :  { %1000 = vmatprep.subr.bf16.mxu1 %v1105_v2  ;;  %v1107_v4 = vld [vmem:[#allocation8 + $0x94] ss:$12 sps:$4 sm:$0xff]   ;;  %302 = vmatpush1.bf16.msra.mxu0 %v1106_v3  ;;  %v1110_v6 = vld [vmem:[#allocation8 + $0x90] ss:$12 sps:$4 sm:$0xff]   ;;  %v1114_v9 = vld [vmem:[#allocation8 + $0x78] ss:$12 sps:$4 sm:$0xff]  }
  0x41   :  { %1001 = vmatpush3.bf16.msra.mxu1 %v1105_v2  ;;  %303 = vmatprep.subr.bf16.mxu0 %v1107_v4  ;;  %v1111_v7 = vld [vmem:[#allocation8 + $0x7c] ss:$12 sps:$4 sm:$0xff]   ;;  %v1113_v8 = vld [vmem:[#allocation8 + $0x80] ss:$12 sps:$4 sm:$0xff]   ;;  %v1115_v10 = vld [vmem:[#allocation8 + $0x64] ss:$12 sps:$4 sm:$0xff]  }
  0x42   :  { %1002 = vmatprep.subr.bf16.mxu1 %v1109_v5  ;;  %v1117_v11 = vld [vmem:[#allocation8 + $0x68] ss:$12 sps:$4 sm:$0xff]   ;;  %v1118_v12 = vld [vmem:[#allocation8 + $0x60] ss:$12 sps:$4 sm:$0xff]   ;;  %v1121_v14 = vld [vmem:[#allocation8 + $0x50] ss:$12 sps:$4 sm:$0xff]   ;;  %1016 = vmatprep.mubr.bf16.mxu1 %v1135_v19 }
  0x43   :  { %v1119_v13 = vld [vmem:[#allocation8 + $0x4c] ss:$12 sps:$4 sm:$0xff]   ;;  %v1122_v15 = vld [vmem:[#allocation8 + $0x48] ss:$12 sps:$4 sm:$0xff]   ;;  %v1126_v18 = vld [vmem:[#allocation8 + $0x30] ss:$12 sps:$4 sm:$0xff]  }
  0x44   :  { %304 = vmatpush1.bf16.msra.mxu0 %v1110_v6  ;;  %v1123_v16 = vld [vmem:[#allocation8 + $0x34] ss:$12 sps:$4 sm:$0xff]   ;;  %v1125_v17 = vld [vmem:[#allocation8 + $0x38] ss:$12 sps:$4 sm:$0xff]   ;;  %v1127_v20 = vld [vmem:[#allocation8 + $0x1c] ss:$12 sps:$4 sm:$0xff]  }
  0x45   :  { %1003 = vmatpush3.bf16.msra.mxu1 %v1109_v5  ;;  %305 = vmatprep.subr.bf16.mxu0 %v1111_v7  ;;  %v1129_v21 = vld [vmem:[#allocation8 + $0x20] ss:$12 sps:$4 sm:$0xff]   ;;  %v1130_v22 = vld [vmem:[#allocation8 + $0x18] ss:$12 sps:$4 sm:$0xff]   ;;  %v1133_v24 = vld [vmem:[#allocation8 + $0x8] ss:$12 sps:$4 sm:$0xff]  }
  0x46   :  { %1004 = vmatprep.subr.bf16.mxu1 %v1113_v8  ;;  %v1131_v23 = vld [vmem:[#allocation8 + $0x4] ss:$12 sps:$4 sm:$0xff]   ;;  %v1134_v25 = vld [vmem:[#allocation8] ss:$12 sps:$4 sm:$0xff]   ;;  %v1138_v28 = vld [vmem:[#allocation5 + $0x18] sm:$0xff]   ;;  %v1310_v32 = vmov 0.0  }
  0x47   :  { %v1136_v26 = vld [vmem:[#allocation5 + $0x8] sm:$0xff]   ;;  %v1137_v27 = vld [vmem:[#allocation5 + $0x10] sm:$0xff]   ;;  %v1139_v29 = vld [vmem:[#allocation5 + $0x20] sm:$0xff]   ;;  %vm1311_vm0 = vmmov 0   ;;  %s1312_s29 = smov [#allocation11]  }
  0x48   :  { %306 = vmatpush1.bf16.msra.mxu0 %v1114_v9  ;;  %v1140_v30 = vld [vmem:[#allocation5 + $0x28] sm:$0xff]   ;;  %v1141_v31 = vld [vmem:[#allocation10 + $0x78] sm:$0xff]   ;;  %v1143_v34 = vld [vmem:[#allocation10 + $0x70] sm:$0xff]   ;;  %s887_s30 = sshll.u32 %s1312_s29, 4  ;;  %s888_s30 = int_to_ptr.vmem [resolvable:$true] %s887_s30 }
  0x49   :  { %1005 = vmatpush3.bf16.msra.mxu1 %v1113_v8  ;;  %307 = vmatprep.subr.bf16.mxu0 %v1115_v10  ;;  %v1142_v33 = vld [vmem:[#allocation10 + $0x38] sm:$0xff]   ;;  %v1144_v35 = vld [vmem:[#allocation10 + $0x30] sm:$0xff]   ;;  %v1145_v36 = vld [vmem:[#allocation10 + $0x68] sm:$0xff]   ;;  %s1270_s7 = scalar_lea.vmem %s888_s30, 256  ;;  %p1275_p12 = scmp.lt.s32.totalorder %s888_s30, %s888_s30 }
  0x4a   :  { %1006 = vmatprep.subr.bf16.mxu1 %v1117_v11  ;;  %v1146_v37 = vld [vmem:[#allocation10 + $0x28] sm:$0xff]   ;;  %v1147_v38 = vld [vmem:[#allocation10 + $0x60] sm:$0xff]   ;;  %v1149_v40 = vld [vmem:[#allocation10 + $0x58] sm:$0xff]   ;;  %p1271_p11 = scmp.ne.s32.totalorder %s888_s30, %s1270_s7  ;;  %p1276_p13 = scmp.lt.s32.totalorder %s1270_s7, %s1270_s7 }
  0x4b   :  { %v1148_v39 = vld [vmem:[#allocation10 + $0x20] sm:$0xff]   ;;  %v1150_v41 = vld [vmem:[#allocation10 + $0x18] sm:$0xff]   ;;  %v1151_v42 = vld [vmem:[#allocation10 + $0x50] sm:$0xff]  }
  0x4c   :  { %308 = vmatpush1.bf16.msra.mxu0 %v1118_v12  ;;  %v1152_v43 = vld [vmem:[#allocation10 + $0x10] sm:$0xff]   ;;  %v1153_v44 = vld [vmem:[#allocation10 + $0x48] sm:$0xff]   ;;  %v1155_v46 = vld [vmem:[#allocation10 + $0x40] sm:$0xff]   ;;  %p1277_p0 = por %p1276_p13, %p1275_p12 }
  0x4d   :  { %1007 = vmatpush3.bf16.msra.mxu1 %v1117_v11  ;;  %309 = vmatprep.subr.bf16.mxu0 %v1119_v13  ;;  %v1154_v45 = vld [vmem:[#allocation10 + $0x8] sm:$0xff]   ;;  %v1156_v47 = vld [vmem:[#allocation10] sm:$0xff]   ;;  %v1157_v48 = vld [vmem:[#allocation2] sm:$0xff]  }
  0x4e   :  { %1008 = vmatprep.subr.bf16.mxu1 %v1121_v14  ;;  %p1278_p1 = pnand %p1277_p0, %p1271_p11 }
  0x50   :  { %310 = vmatpush1.bf16.msra.mxu0 %v1122_v15 }
  0x51   :  { %1009 = vmatpush3.bf16.msra.mxu1 %v1121_v14  ;;  %311 = vmatprep.subr.bf16.mxu0 %v1123_v16 }
  0x52   :  { %1010 = vmatprep.subr.bf16.mxu1 %v1125_v17 }
  0x54   :  { %312 = vmatpush1.bf16.msra.mxu0 %v1126_v18 }
  0x55   :  { %1011 = vmatpush3.bf16.msra.mxu1 %v1125_v17  ;;  %313 = vmatprep.subr.bf16.mxu0 %v1127_v20 }
  0x56   :  { %1012 = vmatprep.subr.bf16.mxu1 %v1129_v21 }
  0x58   :  { %314 = vmatpush1.bf16.msra.mxu0 %v1130_v22 }
  0x59   :  { %1013 = vmatpush3.bf16.msra.mxu1 %v1129_v21  ;;  %315 = vmatprep.subr.bf16.mxu0 %v1131_v23 }
  0x5a   :  { %1014 = vmatprep.subr.bf16.mxu1 %v1133_v24 }
  0x5c   :  { %316 = vmatpush1.bf16.msra.mxu0 %v1134_v25 }
  0x5d   :  { %1015 = vmatpush3.bf16.msra.mxu1 %v1133_v24  ;;  %1048 = vmatprep.subr.bf16.mxu0 %v1310_v32 }
  0x5e   :  { %1028 = vmatprep.subr.bf16.mxu1 %v1310_v32 }
  0x5f   :  { %334 = vmatmul.mubr.bf16.vlgmr.msra.gmra.mxu0 %v1135_v19 }
  0x60   :  { %1017 = vmatmul.mubr.bf16.vlgmr.msra.gmra.mxu1 %v1136_v26  ;;  %343 = vmatprep.mubr.bf16.mxu0 %v1309_v0 }
  0x61   :  { %1020 = vmatprep.mubr.bf16.mxu1 %v1137_v27  ;;  %1029 = vmatpush3.bf16.msra.mxu1 %v1141_v31 }
  0x62   :  { %1049 = vmatpush3.bf16.msra.mxu0 %v1142_v33  ;;  %1030 = vmatprep.subr.bf16.mxu1 %v1310_v32 }
  0x63   :  { %1050 = vmatprep.subr.bf16.mxu0 %v1310_v32 }
  0x65   :  { %1031 = vmatpush3.bf16.msra.mxu1 %v1143_v34 }
  0x66   :  { %1051 = vmatpush3.bf16.msra.mxu0 %v1144_v35  ;;  %1032 = vmatprep.subr.bf16.mxu1 %v1310_v32 }
  0x67   :  { %344 = vmatmul.mubr.bf16.gmra.mxu0 %v1136_v26  ;;  %1052 = vmatprep.subr.bf16.mxu0 %v1310_v32 }
  0x68   :  { %1021 = vmatmul.mubr.bf16.gmra.mxu1 %v1138_v28  ;;  %353 = vmatprep.mubr.bf16.mxu0 %v1309_v0 }
  0x69   :  { %1024 = vmatprep.mubr.bf16.mxu1 %v1139_v29  ;;  %1033 = vmatpush3.bf16.msra.mxu1 %v1145_v36 }
  0x6a   :  { %1053 = vmatpush3.bf16.msra.mxu0 %v1146_v37  ;;  %1034 = vmatprep.subr.bf16.mxu1 %v1310_v32 }
  0x6b   :  { %1054 = vmatprep.subr.bf16.mxu0 %v1310_v32 }
  0x6d   :  { %1035 = vmatpush3.bf16.msra.mxu1 %v1147_v38 }
  0x6e   :  { %1055 = vmatpush3.bf16.msra.mxu0 %v1148_v39  ;;  %1036 = vmatprep.subr.bf16.mxu1 %v1310_v32 }
  0x6f   :  { %354 = vmatmul.mubr.bf16.gmra.mxu0 %v1137_v27  ;;  %1056 = vmatprep.subr.bf16.mxu0 %v1310_v32 }
  0x70   :  { %1025 = vmatmul.mubr.bf16.gmra.mxu1 %v1140_v30  ;;  %363 = vmatprep.mubr.bf16.mxu0 %v1309_v0 }
  0x71   :  { %1037 = vmatpush3.bf16.msra.mxu1 %v1149_v40  ;;  %1044 = vmatprep.mubr.msk.bf16.mxu1 %vm1311_vm0, %v1310_v32 }
  0x72   :  { %1057 = vmatpush3.bf16.msra.mxu0 %v1150_v41  ;;  %1038 = vmatprep.subr.bf16.mxu1 %v1310_v32 }
  0x73   :  { %1058 = vmatprep.subr.bf16.mxu0 %v1310_v32 }
  0x75   :  { %1039 = vmatpush3.bf16.msra.mxu1 %v1151_v42 }
  0x76   :  { %1059 = vmatpush3.bf16.msra.mxu0 %v1152_v43  ;;  %1040 = vmatprep.subr.bf16.mxu1 %v1310_v32 }
  0x77   :  { %364 = vmatmul.mubr.bf16.gmra.mxu0 %v1138_v28  ;;  %1060 = vmatprep.subr.bf16.mxu0 %v1310_v32 }
  0x78   :  { %373 = vmatprep.mubr.bf16.mxu0 %v1309_v0 }
  0x79   :  { %1041 = vmatpush3.bf16.msra.mxu1 %v1153_v44 }
  0x7a   :  { %1061 = vmatpush3.bf16.msra.mxu0 %v1154_v45  ;;  %1042 = vmatprep.subr.bf16.mxu1 %v1310_v32 }
  0x7b   :  { %1062 = vmatprep.subr.bf16.mxu0 %v1310_v32 }
  0x7d   :  { %1043 = vmatpush3.bf16.msra.mxu1 %v1155_v46 }
  0x7e   :  { %1063 = vmatpush3.bf16.msra.mxu0 %v1156_v47  ;;  %1068 = vmatprep.subr.bf16.mxu1 %v1310_v32 }
  0x7f   :  { %374 = vmatmul.mubr.bf16.gmra.mxu0 %v1139_v29 }
  0x80   :  { %383 = vmatprep.mubr.bf16.mxu0 %v1309_v0 }
  0x87   :  { %384 = vmatmul.mubr.bf16.gmra.mxu0 %v1140_v30 }
  0x88   :  { %1064 = vmatprep.mubr.msk.bf16.mxu0 %vm1311_vm0, %v1310_v32 }
  0x8f   :  { %1065 = vmatmul.mubr.bf16.vlgmr.msra.gmra.mxu0 %v1157_v48 }
 0x11f   :  { %v335_v49 = vpop.f32.mrf.mxu0 }
 0x120   :  { %v1018_v50 = vpop.f32.mrf.mxu1 }
 0x121   :  { %v337_v51 = vpop.f32.mrf.mxu0 }
 0x122   :  { %v426_v52 = vpop.f32.mrf.mxu1  ;;  %v481_v53 = vadd.f32 %v1018_v50, %v337_v51  ;;  %v1158_v51 = vld [vmem:[#allocation10 + $0xb8] sm:$0xff]  }
 0x123   :  { %v339_v54 = vpop.f32.mrf.mxu0 }
 0x124   :  { %v1019_v55 = vpop.f32.mrf.mxu1 }
 0x125   :  { %v341_v56 = vpop.f32.mrf.mxu0 }
 0x126   :  { %v428_v57 = vpop.f32.mrf.mxu1  ;;  %v482_v17 = vadd.f32 %v1019_v55, %v341_v56  ;;  %v1161_v55 = vld [vmem:[#allocation10 + $0xa0] sm:$0xff]   ;;  %v1162_v56 = vld [vmem:[#allocation10 + $0x98] sm:$0xff]  }
 0x127   :  { %v345_v58 = vpop.f32.mrf.mxu0  ;;  %v1163_v57 = vld [vmem:[#allocation10 + $0x90] sm:$0xff]  }
 0x128   :  { %v1022_v59 = vpop.f32.mrf.mxu1  ;;  %v471_v25 = vmax.f32 %v335_v49, %v345_v58  ;;  %v1164_v58 = vld [vmem:[#allocation10 + $0x88] sm:$0xff]  }
 0x129   :  { %v347_v60 = vpop.f32.mrf.mxu0 }
 0x12a   :  { %v440_v61 = vpop.f32.mrf.mxu1 }
 0x12b   :  { %v349_v62 = vpop.f32.mrf.mxu0  ;;  %v483_v13 = vadd.f32 %v440_v61, %v347_v60 }
 0x12c   :  { %v1023_v63 = vpop.f32.mrf.mxu1  ;;  %v472_v27 = vmax.f32 %v339_v54, %v349_v62  ;;  %v1160_v54 = vld [vmem:[#allocation10 + $0xa8] sm:$0xff]  }
 0x12d   :  { %v351_v0 = vpop.f32.mrf.mxu0  ;;  %v485_v21 = vmax.f32 %v481_v53, %v483_v13  ;;  %v1159_v53 = vld [vmem:[#allocation10 + $0xb0] sm:$0xff]  }
 0x12e   :  { %v443_v2 = vpop.f32.mrf.mxu1 }
 0x12f   :  { %v355_v1 = vpop.f32.mrf.mxu0  ;;  %v484_v14 = vadd.f32 %v443_v2, %v351_v0 }
 0x130   :  { %v1026_v5 = vpop.f32.mrf.mxu1  ;;  %v473_v31 = vmax.f32 %v471_v25, %v355_v1 }
 0x131   :  { %v357_v3 = vpop.f32.mrf.mxu0  ;;  %v486_v22 = vmax.f32 %v482_v17, %v484_v14 }
 0x132   :  { %v456_v8 = vpop.f32.mrf.mxu1  ;;  %v487_v18 = vadd.f32 %v1022_v59, %v357_v3  ;;  %v1165_v59 = vld [vmem:[#allocation10 + $0x80] sm:$0xff]  }
 0x133   :  { %v359_v4 = vpop.f32.mrf.mxu0 }
 0x134   :  { %v1027_v11 = vpop.f32.mrf.mxu1  ;;  %v489_v28 = vmax.f32 %v485_v21, %v487_v18  ;;  %v474_v34 = vmax.f32 %v472_v27, %v359_v4  ;;  %v845_v18 = vlaneseq }
 0x135   :  { %v361_v6 = vpop.f32.mrf.mxu0 }
 0x136   :  { %v459_v15 = vpop.f32.mrf.mxu1  ;;  %v488_v19 = vadd.f32 %v1023_v63, %v361_v6  ;;  %v956_v6 = vld [vmem:[%s1431_s5] ss:$0 sm:$0xff] }
 0x137   :  { %v365_v7 = vpop.f32.mrf.mxu0 }
 0x138   :  { %v490_v29 = vmax.f32 %v486_v22, %v488_v19  ;;  %v475_v39 = vmax.f32 %v473_v31, %v365_v7  ;;  %v846_v19 = vand.u32 127, %v845_v18 }
 0x139   :  { %v367_v9 = vpop.f32.mrf.mxu0 }
 0x13a   :  { %v491_v23 = vadd.f32 %v456_v8, %v367_v9  ;;  %v833_v9 = vld [vmem:[#allocation7] sm:$0xff]  ;;  %vm847_vm1 = vcmp.lt.s32.totalorder %v846_v19, 32 }
 0x13b   :  { %v369_v10 = vpop.f32.mrf.mxu0 }
 0x13c   :  { %v493_v35 = vmax.f32 %v489_v28, %v491_v23  ;;  %v476_v40 = vmax.f32 %v474_v34, %v369_v10 }
 0x13d   :  { %v371_v12 = vpop.f32.mrf.mxu0 }
 0x13e   :  { %v492_v24 = vadd.f32 %v459_v15, %v371_v12  ;;  %v834_v15 = vld [vmem:[#allocation7 + $0x8] sm:$0xff] }
 0x13f   :  { %v375_v16 = vpop.f32.mrf.mxu0 }
 0x140   :  { %v494_v36 = vmax.f32 %v490_v29, %v492_v24  ;;  %v477_v44 = vmax.f32 %v475_v39, %v375_v16 }
 0x141   :  { %v377_v20 = vpop.f32.mrf.mxu0 }
 0x142   :  { %v495_v30 = vadd.f32 %v1026_v5, %v377_v20 }
 0x143   :  { %v379_v26 = vpop.f32.mrf.mxu0 }
 0x144   :  { %v497_v41 = vmax.f32 %v493_v35, %v495_v30  ;;  %v478_v45 = vmax.f32 %v476_v40, %v379_v26  ;;  %v958_v40 = vld [vmem:[%s1431_s5 + $0x2] ss:$0 sm:$0xff] }
 0x145   :  { %v381_v33 = vpop.f32.mrf.mxu0 }
 0x146   :  { %v496_v37 = vadd.f32 %v1027_v11, %v381_v33 }
 0x147   :  { %v385_v38 = vpop.f32.mrf.mxu0 }
 0x148   :  { %v498_v42 = vmax.f32 %v494_v36, %v496_v37  ;;  %v479_v48 = vmax.f32 %v477_v44, %v385_v38  ;;  %v957_v38 = vld [vmem:[%s1431_s5 + $0x1] ss:$0 sm:$0xff] }
 0x149   :  { %v387_v43 = vpop.f32.mrf.mxu0 }
 0x14a   :  { %v718_v46 = vpack.c.bf16 %v498_v42, %v497_v41 }
 0x14b   :  { %v388_v47 = vpop.f32.mrf.mxu0 }
 0x14c   :  { %v480_v49 = vmax.f32 %v478_v45, %v388_v47 }
 0x14d   :  { %v390_v50 = vpop.f32.mrf.mxu0 }
 0x14e   :  { %v517_v52 = vpack.c.bf16 %v480_v49, %v479_v48 }
 0x14f   :  { %v711_v60 = vpop.f32.mrf.mxu0 }
 0x150   :  { %1045 = vmatmul.mubr.bf16.vlgmr.msra.gmra.mxu1 %v517_v52 }
 0x151   :  { %1069 = vmatpush3.bf16.msra.mxu1 %v1158_v51  ;;  %1084 = vmatprep.mubr.msk.bf16.mxu1 %vm1311_vm0, %v1310_v32  ;;  %v1066_v61 = vpop.f32.mrf.mxu0 }
 0x152   :  { %1070 = vmatprep.subr.bf16.mxu1 %v1310_v32 }
 0x153   :  { %v714_v62 = vpop.f32.mrf.mxu0 }
 0x155   :  { %1071 = vmatpush3.bf16.msra.mxu1 %v1159_v53  ;;  %v1067_v63 = vpop.f32.mrf.mxu0 }
 0x156   :  { %1072 = vmatprep.subr.bf16.mxu1 %v1310_v32 }
 0x159   :  { %1073 = vmatpush3.bf16.msra.mxu1 %v1160_v54 }
 0x15a   :  { %1074 = vmatprep.subr.bf16.mxu1 %v1310_v32 }
 0x15d   :  { %1075 = vmatpush3.bf16.msra.mxu1 %v1161_v55 }
 0x15e   :  { %1076 = vmatprep.subr.bf16.mxu1 %v1310_v32 }
 0x161   :  { %1077 = vmatpush3.bf16.msra.mxu1 %v1162_v56 }
 0x162   :  { %1078 = vmatprep.subr.bf16.mxu1 %v1310_v32 }
 0x165   :  { %1079 = vmatpush3.bf16.msra.mxu1 %v1163_v57 }
 0x166   :  { %1080 = vmatprep.subr.bf16.mxu1 %v1310_v32 }
 0x169   :  { %1081 = vmatpush3.bf16.msra.mxu1 %v1164_v58 }
 0x16a   :  { %1082 = vmatprep.subr.bf16.mxu1 %v1310_v32 }
 0x16d   :  { %1083 = vmatpush3.bf16.msra.mxu1 %v1165_v59 }
 0x170   :  { %1085 = vmatmul.mubr.bf16.vlgmr.msra.gmra.mxu1 %v718_v46 }
 0x210   :  { %v616_v0 = vpop.f32.mrf.mxu1 }
 0x211   :  { %v712_v4 = vadd.f32 %v711_v60, %v616_v0 }
 0x212   :  { %v1046_v1 = vpop.f32.mrf.mxu1 }
 0x214   :  { %v619_v2 = vpop.f32.mrf.mxu1 }
 0x215   :  { %v715_v32 = vadd.f32 %v714_v62, %v619_v2 }
 0x216   :  { %v1047_v3 = vpop.f32.mrf.mxu1 }
 0x230   :  { %v817_v5 = vpop.f32.mrf.mxu1 }
 0x231   :  { %v824_v7 = vadd.f32 %v817_v5, %v712_v4 }
 0x232   :  { %v1086_v8 = vpop.f32.mrf.mxu1 }
 0x233   :  { %v831_v10 = vadd.f32 %v956_v6, %v824_v7 }
 0x234   :  { %v820_v11 = vpop.f32.mrf.mxu1 }
 0x235   :  { %v825_v12 = vadd.f32 %v820_v11, %v715_v32  ;;  %v835_v13 = vadd.f32 %v833_v9, %v831_v10 }
 0x236   :  { %v1087_v14 = vpop.f32.mrf.mxu1 }
 0x237   :  { %v832_v16 = vadd.f32 %v956_v6, %v825_v12  ;;  %837 = vadd.xlane.f32.xlu0 %v835_v13 }
 0x239   :  { %v836_v17 = vadd.f32 %v834_v15, %v832_v16 }
 0x23b   :  { %839 = vadd.xlane.f32.xlu0 %v836_v17 }
 0x2c0   :  { %v838_v20 = vpop.xlane.xlu0 %837 }
 0x2c1   :  { %v841_v21 = vmul.f32 0.03125, %v838_v20 }
 0x2c3   :  { %v843_v22 = vsub.f32 %v835_v13, %v841_v21 }
 0x2c4   :  { %v840_v23 = vpop.xlane.xlu0 %839 }
 0x2c5   :  { %v842_v24 = vmul.f32 0.03125, %v840_v23  ;;  %v850_v25 = vsel %vm847_vm1, %v843_v22, 0.0 }
 0x2c6   :  { %v852_v26 = vmul.f32 %v850_v25, %v850_v25 }
 0x2c7   :  { %v844_v27 = vsub.f32 %v836_v17, %v842_v24 }
 0x2c8   :  { %854 = vadd.xlane.f32.xlu1 %v852_v26 }
 0x2c9   :  { %v851_v28 = vsel %vm847_vm1, %v844_v27, 0.0 }
 0x2ca   :  { %v853_v29 = vmul.f32 %v851_v28, %v851_v28 }
 0x2cc   :  { %856 = vadd.xlane.f32.xlu1 %v853_v29 }
 0x351   :  { %v855_v30 = vpop.xlane.xlu1 %854 }
 0x352   :  { %v858_v31 = vmul.f32 0.03125, %v855_v30 }
 0x354   :  { %v860_v33 = vadd.f32 1e-12, %v858_v31 }
 0x355   :  { %v857_v34 = vpop.xlane.xlu1 %856 }
 0x356   :  { %1166 = vrsqrt.f32 %v860_v33  ;;  %v859_v35 = vmul.f32 0.03125, %v857_v34 }
 0x358   :  { %v861_v36 = vadd.f32 1e-12, %v859_v35 }
 0x35a   :  { %1168 = vrsqrt.f32 %v861_v36 }
 0x363   :  { %v1167_v37 = vpop.eup %1166 }
 0x364   :  { %v864_v39 = vmul.f32 %v1167_v37, %v850_v25 }
 0x366   :  { %v871_v41 = vmul.f32 %v957_v38, %v864_v39 }
 0x367   :  { %v1169_v42 = vpop.eup %1168 }
 0x368   :  { %v865_v43 = vmul.f32 %v1169_v42, %v851_v28  ;;  %v878_v44 = vadd.f32 %v958_v40, %v871_v41 }
 0x36a   :  { %v872_v45 = vmul.f32 %v957_v38, %v865_v43  ;;  %880 = vst [vmem:[#allocation11] sm:$0xff] %v878_v44 }
 0x36c   :  { %v879_v46 = vadd.f32 %v958_v40, %v872_v45 }
 0x36e   :  { %881 = vst [vmem:[#allocation11 + $0x8] sm:$0xff] %v879_v46 }
 0x36f   :  { %1281 = shalt.err (!%p1278_p1)
}
 0x370   :  { %893 = dma.vmem_to_hbm [thread:$0]  %s888_s30, 256, %s1432_s6, [#allocation4], %s1306_s17, %s1306_s17, %s1307_s18  }
 0x371   :  { %1296 = dma.done.wait [#allocation4], 256  }
 0x372   :  { %1297 = vsyncadd [#allocation4], 4294967040 }
 0x373   :  { %897 = vsyncpa [#allocation3], 1 }
 0x374   :  { %898 = vsyncpa [#allocation6], 1 }
 0x375   :  { %899 = vsyncpa [#allocation9], 1 }
 0x376   :  { %900 = vsyncpa [#allocation4], 1 }

</bundles_post_ra>
